<compile_context>
chip_gen: v5e
topology: v5e:2x2
jax: 0.10.0
libtpu: 0.0.40
codegen_flags: <defaults>
</compile_context>

<pallas_src>
import functools

import jax
import jax.numpy as jnp
import numpy as np
from jax import lax
from jax.experimental import pallas as pl
from jax.experimental.pallas import tpu as pltpu


def _round_up(x, m):
    return (x + m - 1) // m * m


def textcnn_kernel(ids_ref, tw_ref, bc_ref, w1_ref, b1_ref, w2_ref, b2_ref,
                   out_ref, *, TB, L_pad, L, K, Fp):
    # ids_ref: (TB*L_pad, 1) int32          tw_ref: (V_pad, K*Fp) bf16
    # bc_ref: (1, Fp) f32                   w1_ref: (Fp, Hp) f32   b1_ref: (1, Hp) f32
    # w2_ref: (Hp, Cp) f32                  b2_ref: (1, Cp) f32    out_ref: (TB, Cp) f32
    TBL = TB * L_pad
    V_pad = tw_ref.shape[0]
    L_out = L - K + 1

    # ---- Embedding gather + Conv1d contraction fused into ONE MXU matmul. ----
    # onehot[r, v] = 1 iff ids[r] == v (vector compare; padded/OOB ids -> zero row).
    ids_col = ids_ref[...]                                            # (TBL, 1) int32
    iota_v = lax.broadcasted_iota(jnp.int32, (TBL, V_pad), 1)
    onehot = jnp.where(iota_v == ids_col, 1.0, 0.0).astype(jnp.bfloat16)

    # y[r, k*Fp + f] = sum_e emb(ids[r])[e] * conv_w[k, e, f]  (f32 MXU accumulation)
    y = jnp.dot(onehot, tw_ref[...], preferred_element_type=jnp.float32)  # (TBL, K*Fp)
    y = y.reshape(TB, L_pad, K * Fp)          # free sublane split: L_pad % 8 == 0

    # conv[b, t, f] = sum_k y[b, t + k, k*Fp + f]   (Conv1d = cross-correlation)
    conv = y[:, 0:L_out, 0:Fp]
    for k in range(1, K):                     # K is small & static
        conv = conv + y[:, k:k + L_out, k * Fp:(k + 1) * Fp]

    # Global max-pool over time; bias is time-invariant, so add it after the max.
    pooled = jnp.max(conv, axis=1) + bc_ref[...]                      # (TB, Fp) f32

    # MLP head: Linear -> (Dropout: identity at eval) -> ReLU -> Linear, all f32.
    h = jnp.dot(pooled, w1_ref[...], preferred_element_type=jnp.float32) + b1_ref[...]
    h = jnp.maximum(h, 0.0)
    logits = jnp.dot(h, w2_ref[...], preferred_element_type=jnp.float32) + b2_ref[...]
    out_ref[...] = logits.astype(out_ref.dtype)


def _pack_fused_table_conv(params, Fp, V_pad):
    """tw[v, k*Fp + f] = sum_e embedding[v, e] * conv_w[k, e, f]; zero-padded, bf16."""
    f32 = jnp.float32
    table = params["embedding"].astype(f32)                           # (V, E)
    wc = params["conv_w"].astype(f32)                                 # (K, E, F)
    K, E, F = wc.shape
    V = table.shape[0]
    wf = jnp.zeros((E, K, Fp), f32).at[:, :, :F].set(jnp.transpose(wc, (1, 0, 2)))
    tw = jnp.zeros((V_pad, K * Fp), f32).at[:V].set(table @ wf.reshape(E, K * Fp))
    return tw.astype(jnp.bfloat16)


def textcnn_forward(input_ids, params, *, tile_b=128):
    f32 = jnp.float32
    K, E, F = params["conv_w"].shape
    H = params["lin1_w"].shape[1]
    C = params["lin2_w"].shape[1]
    V = params["embedding"].shape[0]

    LANE = 128
    Fp, Hp, Cp = _round_up(F, LANE), _round_up(H, LANE), _round_up(C, LANE)
    V_pad = _round_up(V, LANE)

    # Fused (embedding x conv-weight) matrix, bf16 (halves VMEM residency; the MXU
    # accumulates in f32).  Head weights stay f32 (tiny) for fidelity to the module.
    tw = _pack_fused_table_conv(params, Fp, V_pad)
    bc = jnp.zeros((1, Fp), f32).at[:, :F].set(params["conv_b"].astype(f32).reshape(1, F))
    w1 = jnp.zeros((Fp, Hp), f32).at[:F, :H].set(params["lin1_w"].astype(f32))
    b1 = jnp.zeros((1, Hp), f32).at[:, :H].set(params["lin1_b"].astype(f32).reshape(1, H))
    w2 = jnp.zeros((Hp, Cp), f32).at[:H, :C].set(params["lin2_w"].astype(f32))
    b2 = jnp.zeros((1, Cp), f32).at[:, :C].set(params["lin2_b"].astype(f32).reshape(1, C))

    # Batch / sequence padding and tiling.  L -> multiple of 8 (free reshape in the
    # kernel).  TB is as large as tile_b allows (amortizes per-step overhead, fills
    # MXU sublanes) but split >= 2 ways when possible so both v7x cores get a tile.
    # Size TB so TB*L_pad*V_pad*(2+4) bytes (onehot bf16 + its f32 staging) fits VMEM.
    B, L = input_ids.shape
    L_pad = _round_up(L, 8)
    B8 = _round_up(B, 8)
    if B8 >= 16:
        TB = min(tile_b, max(8, (B8 // 2) // 8 * 8))
    else:
        TB = B8
    B_pad = _round_up(B, TB)
    n_tiles = B_pad // TB

    ids = jnp.zeros((B_pad, L_pad), jnp.int32).at[:B, :L].set(input_ids.astype(jnp.int32))
    ids = ids.reshape(B_pad * L_pad, 1)

    flops = (2 * B_pad * L_pad * V_pad * K * Fp
             + 2 * B_pad * Fp * Hp + 2 * B_pad * Hp * Cp)
    bytes_accessed = (ids.size * 4 + tw.size * 2
                      + 4 * (bc.size + w1.size + b1.size + w2.size + b2.size)
                      + B_pad * Cp * 4)

    kernel = functools.partial(textcnn_kernel, TB=TB, L_pad=L_pad, L=L, K=K, Fp=Fp)
    resident = lambda b: (0, 0)   # constant index_map -> stays VMEM-resident

    out = pl.pallas_call(
        kernel,
        out_shape=jax.ShapeDtypeStruct((B_pad, Cp), f32),
        grid_spec=pltpu.PrefetchScalarGridSpec(
            num_scalar_prefetch=0,
            grid=(n_tiles,),
            in_specs=[
                pl.BlockSpec((TB * L_pad, 1), lambda b: (b, 0)),   # per-tile token ids
                pl.BlockSpec((V_pad, K * Fp), resident),           # fused table@conv_w (bf16)
                pl.BlockSpec((1, Fp), resident),                   # conv bias
                pl.BlockSpec((Fp, Hp), resident),                  # lin1 weight
                pl.BlockSpec((1, Hp), resident),                   # lin1 bias
                pl.BlockSpec((Hp, Cp), resident),                  # lin2 weight
                pl.BlockSpec((1, Cp), resident),                   # lin2 bias
            ],
            out_specs=pl.BlockSpec((TB, Cp), lambda b: (b, 0)),
        ),
        compiler_params=pltpu.CompilerParams(
            dimension_semantics=("parallel",),
            vmem_limit_bytes=32 * 1024 * 1024,
        ),
        cost_estimate=pl.CostEstimate(flops=flops, transcendentals=0,
                                      bytes_accessed=bytes_accessed),
    )(ids, tw, bc, w1, b1, w2, b2)

    return out[:B, :C]


def reference_forward(input_ids, params):
    """Mirrors the kernel's dtype policy exactly (fused table rounded to bf16,
    exact row selection, f32 conv-sum / max / head) -> tight comparison."""
    f32 = jnp.float32
    K, E, F = params["conv_w"].shape
    V = params["embedding"].shape[0]
    Fp = _round_up(F, 128)
    tw = _pack_fused_table_conv(params, Fp, _round_up(V, 128)).astype(f32)
    y = jnp.take(tw, input_ids, axis=0)                       # (B, L, K*Fp)
    L = input_ids.shape[1]
    L_out = L - K + 1
    conv = y[:, 0:L_out, 0:F]
    for k in range(1, K):
        conv = conv + y[:, k:k + L_out, k * Fp:k * Fp + F]
    pooled = jnp.max(conv, axis=1) + params["conv_b"].astype(f32).reshape(1, F)
    h = jnp.maximum(pooled @ params["lin1_w"] + params["lin1_b"], 0.0)
    return h @ params["lin2_w"] + params["lin2_b"]


def reference_forward_f32(input_ids, params):
    """PyTorch-faithful all-f32 reference (looser end-to-end sanity check;
    the deliberate bf16 rounding of the fused table is the only deviation)."""
    emb = jnp.take(params["embedding"], input_ids, axis=0)    # (B, L, E)
    wc = params["conv_w"]
    K = wc.shape[0]
    L = input_ids.shape[1]
    L_out = L - K + 1
    conv = sum(jnp.einsum("ble,ef->blf", emb[:, k:k + L_out, :], wc[k]) for k in range(K))
    conv = conv + params["conv_b"]
    pooled = jnp.max(conv, axis=1)
    h = jnp.maximum(pooled @ params["lin1_w"] + params["lin1_b"], 0.0)
    return h @ params["lin2_w"] + params["lin2_b"]


if __name__ == "__main__":
    # Small shapes consistent with the module's hyperparameters.
    VOCAB, E, F, K, H, C = 50, 32, 16, 3, 32, 4
    B, L = 10, 8   # padded to 16 rows -> grid of 2 batch tiles (both v7x cores busy)

    key = jax.random.PRNGKey(0)
    ks = jax.random.split(key, 8)
    params = {
        "embedding": 0.1 * jax.random.normal(ks[0], (VOCAB, E), jnp.float32),
        # PyTorch Conv1d weight is (F, E, K); stored here as (K, E, F).
        "conv_w": 0.1 * jax.random.normal(ks[1], (K, E, F), jnp.float32),
        "conv_b": 0.1 * jax.random.normal(ks[2], (1, F), jnp.float32),
        # PyTorch Linear weight is (out, in); stored transposed (in, out).
        "lin1_w": 0.1 * jax.random.normal(ks[3], (F, H), jnp.float32),
        "lin1_b": 0.1 * jax.random.normal(ks[4], (1, H), jnp.float32),
        "lin2_w": 0.1 * jax.random.normal(ks[5], (H, C), jnp.float32),
        "lin2_b": 0.1 * jax.random.normal(ks[6], (1, C), jnp.float32),
    }
    input_ids = jax.random.randint(ks[7], (B, L), 0, VOCAB, dtype=jnp.int32)

    logits = textcnn_forward(input_ids, params, tile_b=128)
    jax.block_until_ready(logits)
    assert logits.shape == (B, C)

    ref = reference_forward(input_ids, params)            # dtype-mirrored, tight check
    assert np.allclose(np.asarray(logits), np.asarray(ref), rtol=1e-3, atol=1e-4), (
        float(np.max(np.abs(np.asarray(logits) - np.asarray(ref)))))

    ref32 = reference_forward_f32(input_ids, params)      # PyTorch-faithful, loose check
    assert np.allclose(np.asarray(logits), np.asarray(ref32), rtol=5e-2, atol=5e-3), (
        float(np.max(np.abs(np.asarray(logits) - np.asarray(ref32)))))

    print("KERNEL_OK")
</pallas_src>

<mosaic_0001>
module attributes {stable_mosaic.version = 11 : i64} {
  func.func @textcnn_kernel(%arg0: i32, %arg1: memref<64x1xi32, #tpu.memory_space<vmem>>, %arg2: memref<128x384xbf16, #tpu.memory_space<vmem>>, %arg3: memref<1x128xf32, #tpu.memory_space<vmem>>, %arg4: memref<128x128xf32, #tpu.memory_space<vmem>>, %arg5: memref<1x128xf32, #tpu.memory_space<vmem>>, %arg6: memref<128x128xf32, #tpu.memory_space<vmem>>, %arg7: memref<1x128xf32, #tpu.memory_space<vmem>>, %arg8: memref<8x128xf32, #tpu.memory_space<vmem>>) attributes {dimension_semantics = [#tpu.dimension_semantics<parallel>], iteration_bounds = array<i64: 2>, scalar_prefetch = 0 : i64, scratch_operands = 0 : i64, tpu.core_type = #tpu.core_type<tc>, window_params = [{transform_indices = @transform_0, window_bounds = array<i64: 64, 1>}, {pipeline_mode = #tpu.pipeline_mode<synchronous>, transform_indices = @transform_1, window_bounds = array<i64: 128, 384>}, {pipeline_mode = #tpu.pipeline_mode<synchronous>, transform_indices = @transform_2, window_bounds = array<i64: 1, 128>}, {pipeline_mode = #tpu.pipeline_mode<synchronous>, transform_indices = @transform_3, window_bounds = array<i64: 128, 128>}, {pipeline_mode = #tpu.pipeline_mode<synchronous>, transform_indices = @transform_4, window_bounds = array<i64: 1, 128>}, {pipeline_mode = #tpu.pipeline_mode<synchronous>, transform_indices = @transform_5, window_bounds = array<i64: 128, 128>}, {pipeline_mode = #tpu.pipeline_mode<synchronous>, transform_indices = @transform_6, window_bounds = array<i64: 1, 128>}, {transform_indices = @transform_7, window_bounds = array<i64: 8, 128>}]} {
    %c0 = arith.constant 0 : index
    %c0_0 = arith.constant 0 : index
    %0 = vector.load %arg1[%c0, %c0_0] : memref<64x1xi32, #tpu.memory_space<vmem>>, vector<64x1xi32>
    %1 = tpu.iota {dimensions = array<i32: 1>} : vector<64x128xi32>
    %2 = vector.broadcast %0 : vector<64x1xi32> to vector<64x128xi32>
    %3 = arith.cmpi eq, %1, %2 : vector<64x128xi32>
    %cst = arith.constant 1.000000e+00 : f32
    %cst_1 = arith.constant 0.000000e+00 : f32
    %4 = vector.broadcast %cst : f32 to vector<64x128xf32>
    %5 = vector.broadcast %cst_1 : f32 to vector<64x128xf32>
    %6 = arith.select %3, %4, %5 : vector<64x128xi1>, vector<64x128xf32>
    %7 = arith.truncf %6 : vector<64x128xf32> to vector<64x128xbf16>
    %c0_2 = arith.constant 0 : index
    %c0_3 = arith.constant 0 : index
    %8 = vector.load %arg2[%c0_2, %c0_3] : memref<128x384xbf16, #tpu.memory_space<vmem>>, vector<128x384xbf16>
    %cst_4 = arith.constant dense<0.000000e+00> : vector<64x384xf32>
    %9 = tpu.matmul %7, %8, %cst_4 {dimension_numbers = #tpu.dot_dimension_numbers<[1], [0], [0], [1], [0, 0, 1, 1], [], []>} : vector<64x128xbf16>, vector<128x384xbf16>, vector<64x384xf32> -> vector<64x384xf32>
    %10 = vector.shape_cast %9 : vector<64x384xf32> to vector<8x8x384xf32>
    %11 = vector.extract_strided_slice %10 {offsets = [0, 0, 0], sizes = [8, 6, 128], strides = [1, 1, 1]} : vector<8x8x384xf32> to vector<8x6x128xf32>
    %12 = vector.extract_strided_slice %10 {offsets = [0, 1, 128], sizes = [8, 6, 128], strides = [1, 1, 1]} : vector<8x8x384xf32> to vector<8x6x128xf32>
    %13 = arith.addf %11, %12 : vector<8x6x128xf32>
    %14 = vector.extract_strided_slice %10 {offsets = [0, 2, 256], sizes = [8, 6, 128], strides = [1, 1, 1]} : vector<8x8x384xf32> to vector<8x6x128xf32>
    %15 = arith.addf %13, %14 : vector<8x6x128xf32>
    %cst_5 = arith.constant dense<0xFF800000> : vector<8x128xf32>
    %16 = vector.multi_reduction <maximumf>, %15, %cst_5 [1] : vector<8x6x128xf32> to vector<8x128xf32>
    %c0_6 = arith.constant 0 : index
    %c0_7 = arith.constant 0 : index
    %17 = vector.load %arg3[%c0_6, %c0_7] : memref<1x128xf32, #tpu.memory_space<vmem>>, vector<1x128xf32>
    %18 = vector.broadcast %17 : vector<1x128xf32> to vector<8x128xf32>
    %19 = arith.addf %16, %18 : vector<8x128xf32>
    %c0_8 = arith.constant 0 : index
    %c0_9 = arith.constant 0 : index
    %20 = vector.load %arg4[%c0_8, %c0_9] : memref<128x128xf32, #tpu.memory_space<vmem>>, vector<128x128xf32>
    %cst_10 = arith.constant dense<0.000000e+00> : vector<8x128xf32>
    %21 = tpu.matmul %19, %20, %cst_10 {dimension_numbers = #tpu.dot_dimension_numbers<[1], [0], [0], [1], [0, 0, 1, 1], [], []>} : vector<8x128xf32>, vector<128x128xf32>, vector<8x128xf32> -> vector<8x128xf32>
    %c0_11 = arith.constant 0 : index
    %c0_12 = arith.constant 0 : index
    %22 = vector.load %arg5[%c0_11, %c0_12] : memref<1x128xf32, #tpu.memory_space<vmem>>, vector<1x128xf32>
    %23 = vector.broadcast %22 : vector<1x128xf32> to vector<8x128xf32>
    %24 = arith.addf %21, %23 : vector<8x128xf32>
    %cst_13 = arith.constant 0.000000e+00 : f32
    %25 = vector.broadcast %cst_13 : f32 to vector<8x128xf32>
    %26 = arith.maximumf %24, %25 : vector<8x128xf32>
    %c0_14 = arith.constant 0 : index
    %c0_15 = arith.constant 0 : index
    %27 = vector.load %arg6[%c0_14, %c0_15] : memref<128x128xf32, #tpu.memory_space<vmem>>, vector<128x128xf32>
    %cst_16 = arith.constant dense<0.000000e+00> : vector<8x128xf32>
    %28 = tpu.matmul %26, %27, %cst_16 {dimension_numbers = #tpu.dot_dimension_numbers<[1], [0], [0], [1], [0, 0, 1, 1], [], []>} : vector<8x128xf32>, vector<128x128xf32>, vector<8x128xf32> -> vector<8x128xf32>
    %c0_17 = arith.constant 0 : index
    %c0_18 = arith.constant 0 : index
    %29 = vector.load %arg7[%c0_17, %c0_18] : memref<1x128xf32, #tpu.memory_space<vmem>>, vector<1x128xf32>
    %30 = vector.broadcast %29 : vector<1x128xf32> to vector<8x128xf32>
    %31 = arith.addf %28, %30 : vector<8x128xf32>
    %c0_19 = arith.constant 0 : index
    %c0_20 = arith.constant 0 : index
    %32 = vector.load %arg8[%c0_19, %c0_20] : memref<8x128xf32, #tpu.memory_space<vmem>>, vector<8x128xf32>
    tpu.vector_store %arg8[%c0_19, %c0_20], %31 {strides = array<i32>} : memref<8x128xf32, #tpu.memory_space<vmem>>, vector<8x128xf32>,
    return
  }
  func.func @transform_0(%arg0: i32) -> (i32, i32) {
    %c0_i32 = arith.constant 0 : i32
    %c0_i32_0 = arith.constant 0 : i32
    return %arg0, %c0_i32 : i32, i32
  }
  func.func @transform_1(%arg0: i32) -> (i32, i32) {
    %c0_i32 = arith.constant 0 : i32
    %c0_i32_0 = arith.constant 0 : i32
    %c0_i32_1 = arith.constant 0 : i32
    return %c0_i32, %c0_i32_0 : i32, i32
  }
  func.func @transform_2(%arg0: i32) -> (i32, i32) {
    %c0_i32 = arith.constant 0 : i32
    %c0_i32_0 = arith.constant 0 : i32
    %c0_i32_1 = arith.constant 0 : i32
    return %c0_i32, %c0_i32_0 : i32, i32
  }
  func.func @transform_3(%arg0: i32) -> (i32, i32) {
    %c0_i32 = arith.constant 0 : i32
    %c0_i32_0 = arith.constant 0 : i32
    %c0_i32_1 = arith.constant 0 : i32
    return %c0_i32, %c0_i32_0 : i32, i32
  }
  func.func @transform_4(%arg0: i32) -> (i32, i32) {
    %c0_i32 = arith.constant 0 : i32
    %c0_i32_0 = arith.constant 0 : i32
    %c0_i32_1 = arith.constant 0 : i32
    return %c0_i32, %c0_i32_0 : i32, i32
  }
  func.func @transform_5(%arg0: i32) -> (i32, i32) {
    %c0_i32 = arith.constant 0 : i32
    %c0_i32_0 = arith.constant 0 : i32
    %c0_i32_1 = arith.constant 0 : i32
    return %c0_i32, %c0_i32_0 : i32, i32
  }
  func.func @transform_6(%arg0: i32) -> (i32, i32) {
    %c0_i32 = arith.constant 0 : i32
    %c0_i32_0 = arith.constant 0 : i32
    %c0_i32_1 = arith.constant 0 : i32
    return %c0_i32, %c0_i32_0 : i32, i32
  }
  func.func @transform_7(%arg0: i32) -> (i32, i32) {
    %c0_i32 = arith.constant 0 : i32
    %c0_i32_0 = arith.constant 0 : i32
    return %arg0, %c0_i32 : i32, i32
  }
}

</mosaic_0001>

<bundles_post_ra>
// kernel: tpu_custom_call.1
= control target key start
LH: loop header
LB: loop body
LE: loop exit
PB: predicated region body
PF: predicated region fallthrough
CT: control target
= control target key end

     0   :  { %12 = vsyncpa [#allocation3], 0  ;;  %s1558_s0 = inlined_call_operand.vmem [shape: s32[128,1], index: 0, kind: input, shape index: {}]   ;;  %s1559_s1 = inlined_call_operand.hbm [shape: bf16[128,384], index: 1, kind: input, shape index: {}]   ;;  %s1560_s2 = inlined_call_operand.vmem [shape: f32[1,128], index: 2, kind: input, shape index: {}]   ;;  %s1561_s3 = inlined_call_operand.vmem [shape: f32[128,128], index: 3, kind: input, shape index: {}]   ;;  %s1562_s4 = inlined_call_operand.vmem [shape: f32[1,128], index: 4, kind: input, shape index: {}]   ;;  %s1563_s5 = inlined_call_operand.hbm [shape: f32[128,128], index: 5, kind: input, shape index: {}]   ;;  %s1564_s6 = inlined_call_operand.vmem [shape: f32[1,128], index: 6, kind: input, shape index: {}]   ;;  %s1565_s7 = inlined_call_operand.hbm [shape: f32[16,128], index: 7, kind: output, shape index: {}]  }
   0x1   :  { %13 = vsyncpa [#allocation6], 0 }
   0x2   :  { %14 = vsyncpa [#allocation4], 0 }
   0x3   :  { %16 = vsyncpa [#allocation4 + $0x1], 0  ;;  %s1367_s24 = smov 0   ;;  %s1369_s25 = smov 0  }
   0x4   :  { %s1371_s26 = smov 0   ;;  %s1373_s27 = smov 0  }
   0x5 LB: > { %s1388_s28 = sadd.s32 4294967295, %s1317_s27   ;;  %s956_s29 = sadd.s32 4294967294, %s1317_s27   ;;  %s1317_s27 = sphi %s1373_s27, %s1572_s27   ;;  %s1313_s26 = sphi %s1371_s26, %s1571_s26   ;;  %s1309_s25 = sphi %s1369_s25, %s1570_s25   ;;  %s1305_s24 = sphi %s1367_s24, %s1569_s24  }
   0x6   : > { %s1392_s30 = sadd.s32 1, %s1317_s27   ;;  %s181_s8 = sadd.s32 1, %s1313_s26 }
   0x7   : > { %s178_s9 = ssub.s32 %s1317_s27, %s1392_s30  ;;  %p191_p0 = scmp.ne.s32.totalorder %s1313_s26, %s1309_s25 }
   0x8   : > { %p179_p1 = scmp.eq.s32.totalorder %s178_s9, 0  ;;  %p192_p2 = scmp.eq.s32.totalorder %s1388_s28, 1 }
   0x9   : > { %p197_p3 = scmp.ne.s32.totalorder %s1309_s25, %s1305_s24  ;;  %p198_p4 = scmp.eq.s32.totalorder %s956_s29, 1 }
   0xa   : > { %s1403_s10 = scalar_select %p179_p1, %s1313_s26, %s181_s8  }
   0xb   : > { %p1405_p5 = por %p192_p2, %p191_p0  ;;  %p1409_p6 = por %p198_p4, %p197_p3 }
   0xc   : > { %p957_p7 = scmp.ge.s32.totalorder %s1317_s27, 1  ;;  %p205_p8 = scmp.lt.s32.totalorder %s1317_s27, 3 }
   0xd   : > { %p1136_p9 = scmp.eq.s32.totalorder %s1388_s28, 0  ;;  %s216_s16 = sshll.u32 %s1559_s1, 4  ;;  %s217_s16 = int_to_ptr.hbm [resolvable:$true] %s216_s16 }
   0xe   : > { %p1416_p10 = pnand %p957_p7, %p205_p8  ;;  %s1319_s17 = smov [#allocation2]  }
   0xf   : > { %s218_s18 = sshll.u32 %s1319_s17, 4  ;;  %s239_s21 = sshll.u32 %s1563_s5, 4  ;;  %s219_s18 = int_to_ptr.vmem [resolvable:$true] %s218_s18  ;;  %s240_s21 = int_to_ptr.hbm [resolvable:$true] %s239_s21 }
  0x10   : > { %p1125_p11 = pneg %p1416_p10  ;;  %s1320_s22 = smov 192  }
  0x11   : > { %s1321_s23 = smov 12   ;;  %s1322_s29 = smov [#allocation5]  }
  0x12   : > { %p1126_p12 = pnand %p1136_p9, %p1125_p11  ;;  %s241_s8 = sshll.u32 %s1322_s29, 4  ;;  %s242_s8 = int_to_ptr.vmem [resolvable:$true] %s241_s8 }
  0x13   : > { %s1323_s9 = smov 128   ;;  %s1324_s14 = smov 8  }
  0x14   : > { %1128 = dma.hbm_to_vmem [thread:$0]  (!%p1126_p12), %s217_s16, 3072, %s219_s18, [#allocation3], %s1320_s22, %s1320_s22, %s1321_s23  }
  0x15   : > { %1131 = dma.hbm_to_vmem [thread:$0]  (!%p1126_p12), %s240_s21, 2048, %s242_s8, [#allocation6], %s1323_s9, %s1323_s9, %s1324_s14  }
  0x16   : > { %269 = sbr.rel (%p1416_p10) target bundleno = 647 (0x287), region = 48 }
  0x1b   : > { %1292 = dma.done.wait (%p1136_p9), [#allocation3], 3072  }
  0x1c   : > { %1294 = vsyncadd (%p1136_p9), [#allocation3], 4294964224 }
  0x1d   : > { %1296 = dma.done.wait (%p1136_p9), [#allocation6], 2048  }
  0x1e   : > { %1298 = vsyncadd (%p1136_p9), [#allocation6], 4294965248  ;;  %s1441_s15 = sshll.u32 %s1388_s28, 3  ;;  %v1325_v0 = vmov 0   ;;  %v1053_v4 = vld [vmem:[#allocation2 + $0xa8] sm:$0xf] }
  0x1f   : > { %1182 = vset.pattern.permute.xlu1 %v1325_v0  ;;  %1181 = vset.pattern.permute.xlu0 %v1325_v0  ;;  %p308_p13 = scmp.lt.s32.totalorder %s1441_s15, 15  ;;  %v1113_v5 = vld [vmem:[#allocation2 + $0xb0] sm:$0xf0]  ;;  %v1112_v6 = vld [vmem:[#allocation2 + $0xac] sm:$0xf]  ;;  %vm678_vm12 = vcmask 1045504   ;;  %s870_s18 = scalar_lea.hbm %s1565_s7, %s1441_s15 }
  0x20   : > { %1183 = vset.pattern.permute.xlu2 %v1325_v0  ;;  %v1055_v7 = vld [vmem:[#allocation2 + $0xb4] sm:$0xf0]  ;;  %v1054_v10 = vor.u32 %v1113_v5, %v1053_v4  ;;  %v1061_v12 = vld [vmem:[#allocation2 + $0xb0] sm:$0xf]  ;;  %v1114_v13 = vld [vmem:[#allocation2 + $0xb8] sm:$0xf0] }
  0x21   : > { %s309_s13 = scalar_select %p308_p13, %s1441_s15, 15  ;;  %v1058_v11 = vor.u32 %v1112_v6, %v1055_v7  ;;  %v1041_v14 = vld [vmem:[#allocation2 + $0x90] sm:$0xf]  ;;  %v1062_v15 = vor.u32 %v1114_v13, %v1061_v12  ;;  %v1110_v16 = vld [vmem:[#allocation2 + $0x98] sm:$0xf0]  ;;  %vm776_vm13 = vcmask 1041409  }
  0x22   : > { %v1109_v17 = vld [vmem:[#allocation2 + $0x94] sm:$0xf]  ;;  %v1043_v18 = vld [vmem:[#allocation2 + $0x9c] sm:$0xf0]  ;;  %527 = vmatpush.bf16.msra.mxu0 %v1054_v10  ;;  %v1042_v19 = vor.u32 %v1110_v16, %v1041_v14  ;;  %v1049_v21 = vld [vmem:[#allocation2 + $0x98] sm:$0xf] }
  0x23   : > { %s966_s16 = sshll.u32 %s309_s13, 3  ;;  %556 = vmatpush.bf16.msra.mxu1 %v1058_v11  ;;  %v1046_v20 = vor.u32 %v1109_v17, %v1043_v18  ;;  %v1111_v22 = vld [vmem:[#allocation2 + $0xa0] sm:$0xf0]  ;;  %v1029_v23 = vld [vmem:[#allocation2 + $0x78] sm:$0xf]  ;;  %585 = vmatpush.bf16.msra.mxu2 %v1062_v15  ;;  %v321_v18 = vlaneseq  ;;  %vm779_vm14 = vcmask 1042434  }
  0x24   : > { %s1448_s19 = scalar_lea.vmem %s1558_s0, %s966_s16  ;;  %v1050_v24 = vor.u32 %v1111_v22, %v1049_v21  ;;  %v1107_v25 = vld [vmem:[#allocation2 + $0x80] sm:$0xf0]  ;;  %v1106_v26 = vld [vmem:[#allocation2 + $0x7c] sm:$0xf]  ;;  %v1031_v27 = vld [vmem:[#allocation2 + $0x84] sm:$0xf0] }
  0x25   : > { %v315_v1 = vld [vmem:[%s1448_s19 + $0x10] sm:$0xff]  ;;  %v313_v2 = vld [vmem:[%s1448_s19] sm:$0xff]  ;;  %v316_v8 = vld [vmem:[%s1448_s19 + $0x18] sm:$0xff]  ;;  %v1030_v31 = vor.u32 %v1107_v25, %v1029_v23  ;;  %v1034_v32 = vor.u32 %v1106_v26, %v1031_v27  ;;  %v1326_v21 = vmov 1.0|1.0   ;;  %vm782_vm15 = vcmask 1043459  }
  0x26   : > { %330 = vperm.xlu1 %1182, %v315_v1   ;;  %324 = vperm.xlu0 %1181, %v313_v2   ;;  %v317_v3 = vld [vmem:[%s1448_s19 + $0x20] sm:$0xff]  ;;  %v314_v9 = vld [vmem:[%s1448_s19 + $0x8] sm:$0xff]  ;;  %v1019_v37 = vld [vmem:[#allocation2 + $0x6c] sm:$0xf0]  ;;  %s304_s14 = sand.u32 1, %s1309_s25   ;;  %s874_s22 = sshll.u32 %s870_s18, 4  ;;  %s875_s22 = int_to_ptr.hbm [resolvable:$true] %s874_s22 }
  0x27   : > { %336 = vperm.xlu2 %1183, %v317_v3   ;;  %v318_v28 = vld [vmem:[%s1448_s19 + $0x28] sm:$0xff]  ;;  %v1037_v29 = vld [vmem:[#allocation2 + $0x80] sm:$0xf]  ;;  %528 = vmatpush.bf16.msra.mxu0 %v1042_v19  ;;  %v1103_v36 = vld [vmem:[#allocation2 + $0x64] sm:$0xf]  ;;  %v322_v19 = vand.u32 127, %v321_v18 }
  0x28   : > { %v1108_v30 = vld [vmem:[#allocation2 + $0x88] sm:$0xf0]  ;;  %557 = vmatpush.bf16.msra.mxu1 %v1046_v20  ;;  %v1017_v33 = vld [vmem:[#allocation2 + $0x60] sm:$0xf]  ;;  %586 = vmatpush.bf16.msra.mxu2 %v1050_v24  ;;  %v1025_v38 = vld [vmem:[#allocation2 + $0x68] sm:$0xf]  ;;  %v1022_v44 = vor.u32 %v1103_v36, %v1019_v37 }
  0x29   : > { %v1038_v34 = vor.u32 %v1108_v30, %v1037_v29  ;;  %v1104_v35 = vld [vmem:[#allocation2 + $0x68] sm:$0xf0]  ;;  %v1105_v39 = vld [vmem:[#allocation2 + $0x70] sm:$0xf0]  ;;  %v320_v40 = vld [vmem:[%s1448_s19 + $0x38] sm:$0xff]  ;;  %s964_s13 = sshll.u32 %s304_s14, 3 }
  0x2a   : > { %v319_v41 = vld [vmem:[%s1448_s19 + $0x30] sm:$0xff]  ;;  %v1005_v42 = vld [vmem:[#allocation2 + $0x48] sm:$0xf]  ;;  %v1018_v43 = vor.u32 %v1104_v35, %v1017_v33  ;;  %v1100_v46 = vld [vmem:[#allocation2 + $0x4c] sm:$0xf]  ;;  %v1026_v47 = vor.u32 %v1105_v39, %v1025_v38  ;;  %s306_s20 = scalar_lea.vmem [#allocation7], %s964_s13 }
  0x2b   : > { %529 = vmatpush.bf16.msra.mxu0 %v1030_v31  ;;  %v1101_v45 = vld [vmem:[#allocation2 + $0x50] sm:$0xf0]  ;;  %v1007_v48 = vld [vmem:[#allocation2 + $0x54] sm:$0xf0]  ;;  %v1013_v49 = vld [vmem:[#allocation2 + $0x50] sm:$0xf] }
  0x2c   : > { %558 = vmatpush.bf16.msra.mxu1 %v1034_v32  ;;  %587 = vmatpush.bf16.msra.mxu2 %v1038_v34  ;;  %v1102_v50 = vld [vmem:[#allocation2 + $0x58] sm:$0xf0]  ;;  %v1006_v51 = vor.u32 %v1101_v45, %v1005_v42  ;;  %v1010_v52 = vor.u32 %v1100_v46, %v1007_v48  ;;  %v993_v53 = vld [vmem:[#allocation2 + $0x30] sm:$0xf]  ;;  %v1097_v56 = vld [vmem:[#allocation2 + $0x34] sm:$0xf] }
  0x2d   : > { %v1014_v54 = vor.u32 %v1102_v50, %v1013_v49  ;;  %v1098_v55 = vld [vmem:[#allocation2 + $0x38] sm:$0xf0]  ;;  %v995_v57 = vld [vmem:[#allocation2 + $0x3c] sm:$0xf0]  ;;  %v1001_v58 = vld [vmem:[#allocation2 + $0x38] sm:$0xf] }
  0x2e   : > { %333 = vperm.xlu1 %1182, %v316_v8   ;;  %327 = vperm.xlu0 %1181, %v314_v9   ;;  %v1099_v59 = vld [vmem:[#allocation2 + $0x40] sm:$0xf0]  ;;  %v994_v60 = vor.u32 %v1098_v55, %v993_v53  ;;  %v998_v61 = vor.u32 %v1097_v56, %v995_v57  ;;  %v981_v63 = vld [vmem:[#allocation2 + $0x18] sm:$0xf]  ;;  %v1094_v1 = vld [vmem:[#allocation2 + $0x1c] sm:$0xf] }
  0x2f   : > { %339 = vperm.xlu2 %1183, %v318_v28   ;;  %530 = vmatpush.bf16.msra.mxu0 %v1018_v43  ;;  %v1002_v62 = vor.u32 %v1099_v59, %v1001_v58  ;;  %v1095_v0 = vld [vmem:[#allocation2 + $0x20] sm:$0xf0]  ;;  %v983_v3 = vld [vmem:[#allocation2 + $0x24] sm:$0xf0]  ;;  %v989_v4 = vld [vmem:[#allocation2 + $0x20] sm:$0xf] }
  0x30   : > { %559 = vmatpush.bf16.msra.mxu1 %v1022_v44  ;;  %588 = vmatpush.bf16.msra.mxu2 %v1026_v47  ;;  %v982_v2 = vor.u32 %v1095_v0, %v981_v63  ;;  %v1096_v5 = vld [vmem:[#allocation2 + $0x28] sm:$0xf0]  ;;  %v986_v6 = vor.u32 %v1094_v1, %v983_v3  ;;  %v969_v8 = vld [vmem:[#allocation2] sm:$0xf]  ;;  %v1091_v10 = vld [vmem:[#allocation2 + $0x4] sm:$0xf] }
  0x31   : > { %v990_v7 = vor.u32 %v1096_v5, %v989_v4  ;;  %v1092_v9 = vld [vmem:[#allocation2 + $0x8] sm:$0xf0]  ;;  %v971_v12 = vld [vmem:[#allocation2 + $0xc] sm:$0xf0]  ;;  %v977_v13 = vld [vmem:[#allocation2 + $0x8] sm:$0xf] }
  0x32   : > { %v970_v11 = vor.u32 %v1092_v9, %v969_v8  ;;  %v1093_v14 = vld [vmem:[#allocation2 + $0x10] sm:$0xf0]  ;;  %v974_v15 = vor.u32 %v1091_v10, %v971_v12  ;;  %v762_v36 = vld [vmem:[%s1561_s3 + $0x78] sm:$0xff]  ;;  %v759_v42 = vld [vmem:[%s1561_s3 + $0x60] sm:$0xff]  ;;  %s872_s21 = sshll.u32 %s306_s20, 4  ;;  %s860_s23 = scalar_lea.sflag [#allocation4], %s304_s14  ;;  %s873_s21 = int_to_ptr.vmem [resolvable:$true] %s872_s21 }
  0x33   : > { %531 = vmatpush.bf16.msra.mxu0 %v1006_v51  ;;  %v978_v16 = vor.u32 %v1093_v14, %v977_v13  ;;  %797 = vmatpush.msra.mxu3 %v762_v36  ;;  %v758_v43 = vld [vmem:[%s1561_s3 + $0x58] sm:$0xff]  ;;  %v757_v46 = vld [vmem:[%s1561_s3 + $0x50] sm:$0xff]  ;;  %v756_v49 = vld [vmem:[%s1561_s3 + $0x48] sm:$0xff]  ;;  %s1261_s29 = sshra.s32 %s875_s22, 4  ;;  %s1267_s16 = scalar_lea.hbm %s1565_s7, 16  ;;  %s1262_s29 = int_to_ptr.hbm [resolvable:$true] %s1261_s29 }
  0x34   : > { %560 = vmatpush.bf16.msra.mxu1 %v1010_v52  ;;  %589 = vmatpush.bf16.msra.mxu2 %v1014_v54  ;;  %v755_v53 = vld [vmem:[%s1561_s3 + $0x40] sm:$0xff]  ;;  %v754_v58 = vld [vmem:[%s1561_s3 + $0x38] sm:$0xff]  ;;  %v749_v18 = vld [vmem:[%s1561_s3 + $0x10] sm:$0xff]  ;;  %s1263_s8 = scalar_lea.hbm %s1262_s29, 8  ;;  %p1268_p3 = scmp.lt.s32.totalorder %s1262_s29, %s1565_s7 }
  0x35   : > { %v751_v13 = vld [vmem:[%s1561_s3 + $0x20] sm:$0xff]  ;;  %p1264_p0 = scmp.ne.s32.totalorder %s1262_s29, %s1263_s8  ;;  %p1269_p4 = scmp.lt.s32.totalorder %s1267_s16, %s1263_s8 }
  0x36   : > { %345 = vperm.xlu1 %1182, %v320_v40   ;;  %342 = vperm.xlu0 %1181, %v319_v41   ;;  %v761_v40 = vld [vmem:[%s1561_s3 + $0x70] sm:$0xff]  ;;  %v760_v41 = vld [vmem:[%s1561_s3 + $0x68] sm:$0xff] }
  0x37   : > { %532 = vmatpush.bf16.msra.mxu0 %v994_v60  ;;  %798 = vmatpush.msra.mxu3 %v761_v40  ;;  %p1265_p1 = pnand %p1264_p0, %p1405_p5  ;;  %p1270_p7 = por %p1269_p4, %p1268_p3 }
  0x38   : > { %561 = vmatpush.bf16.msra.mxu1 %v998_v61  ;;  %590 = vmatpush.bf16.msra.mxu2 %v1002_v62 }
  0x39   : > { %799 = vmatpush.msra.mxu3 %v760_v41  ;;  %v833_v41 = vld [vmem:[#allocation5 + $0x78] sm:$0xff]  ;;  %p1266_p2 = pneg %p1265_p1 }
  0x3b   : > { %533 = vmatpush.bf16.msra.mxu0 %v982_v2  ;;  %800 = vmatpush.msra.mxu3 %v759_v42  ;;  %v753_v2 = vld [vmem:[%s1561_s3 + $0x30] sm:$0xff]  ;;  %p1271_p8 = pnand %p1270_p7, %p1266_p2 }
  0x3c   : > { %562 = vmatpush.bf16.msra.mxu1 %v986_v6  ;;  %591 = vmatpush.bf16.msra.mxu2 %v990_v7  ;;  %v752_v7 = vld [vmem:[%s1561_s3 + $0x28] sm:$0xff]  ;;  %v832_v42 = vld [vmem:[#allocation5 + $0x70] sm:$0xff] }
  0x3d   : > { %801 = vmatpush.msra.mxu3 %v758_v43 }
  0x3f   : > { %534 = vmatpush.bf16.msra.mxu0 %v970_v11  ;;  %802 = vmatpush.msra.mxu3 %v757_v46 }
  0x40   : > { %563 = vmatpush.bf16.msra.mxu1 %v974_v15  ;;  %592 = vmatpush.bf16.msra.mxu2 %v978_v16  ;;  %v750_v15 = vld [vmem:[%s1561_s3 + $0x18] sm:$0xff] }
  0x41   : > { %803 = vmatpush.msra.mxu3 %v756_v49  ;;  %v831_v49 = vld [vmem:[#allocation5 + $0x68] sm:$0xff] }
  0x43   : > { %804 = vmatpush.msra.mxu3 %v755_v53 }
  0x45   : > { %805 = vmatpush.msra.mxu3 %v754_v58 }
  0x47   : > { %806 = vmatpush.msra.mxu3 %v753_v2  ;;  %v828_v2 = vld [vmem:[#allocation5 + $0x50] sm:$0xff] }
  0x49   : > { %807 = vmatpush.msra.mxu3 %v752_v7 }
  0x4b   : > { %808 = vmatpush.msra.mxu3 %v751_v13 }
  0x4d   : > { %809 = vmatpush.msra.mxu3 %v750_v15 }
  0x4f   : > { %810 = vmatpush.msra.mxu3 %v749_v18 }
  0x81   : > { %v337_v24 = vpop.permute.xlu2 %336 }
  0x82   : > { %vm351_vm6 = vcmp.eq.s32.totalorder %v322_v19, %v337_v24 }
  0x89   : > { %v340_v25 = vpop.permute.xlu2 %339 }
  0x8a   : > { %vm352_vm7 = vcmp.eq.s32.totalorder %v322_v19, %v340_v25 }
  0x8b   : > { %vm1067_vm8 = vmpackc.low %vm352_vm7, %vm351_vm6 }
  0x98   : > { %v325_v17 = vpop.permute.xlu0 %324  ;;  %v331_v22 = vpop.permute.xlu1 %330 }
  0x99   : > { %vm347_vm1 = vcmp.eq.s32.totalorder %v322_v19, %v325_v17  ;;  %vm349_vm3 = vcmp.eq.s32.totalorder %v322_v19, %v331_v22 }
  0xa0   : > { %v328_v20 = vpop.permute.xlu0 %327  ;;  %v334_v23 = vpop.permute.xlu1 %333 }
  0xa1   : > { %vm348_vm0 = vcmp.eq.s32.totalorder %v322_v19, %v328_v20  ;;  %vm350_vm4 = vcmp.eq.s32.totalorder %v322_v19, %v334_v23 }
  0xa2   : > { %vm1063_vm2 = vmpackc.low %vm348_vm0, %vm347_vm1  ;;  %vm785_vm0 = vcmask 1044484   ;;  %vm788_vm1 = vcmask 1045509  }
  0xa3   : > { %1064 = vmatmul.msk.bf16.vlgmr.msra.gmra.mxu0 %vm1063_vm2, %v1326_v21  ;;  %1072 = vmatmul.msk.bf16.vlgmr.msra.gmra.mxu1 %vm1063_vm2, %v1326_v21  ;;  %vm1065_vm5 = vmpackc.low %vm350_vm4, %vm349_vm3  ;;  %vm794_vm3 = vcmask 1047559  }
  0xa4   : > { %1080 = vmatmul.msk.bf16.vlgmr.msra.gmra.mxu2 %vm1063_vm2, %v1326_v21  ;;  %vm791_vm2 = vcmask 1046534  }
  0xa8   : > { %v346_v26 = vpop.permute.xlu1 %345  ;;  %v343_v27 = vpop.permute.xlu0 %342 }
  0xa9   : > { %vm354_vm9 = vcmp.eq.s32.totalorder %v322_v19, %v346_v26  ;;  %vm353_vm10 = vcmp.eq.s32.totalorder %v322_v19, %v343_v27  ;;  %v748_v26 = vld [vmem:[%s1561_s3 + $0x8] sm:$0xff] }
  0xaa   : > { %vm1069_vm11 = vmpackc.low %vm354_vm9, %vm353_vm10  ;;  %811 = vmatpush.msra.mxu3 %v748_v26 }
  0xb3   : > { %1066 = vmatmul.msk.bf16.gmra.mxu0 %vm1065_vm5, %v1326_v21  ;;  %1074 = vmatmul.msk.bf16.gmra.mxu1 %vm1065_vm5, %v1326_v21 }
  0xb4   : > { %1082 = vmatmul.msk.bf16.gmra.mxu2 %vm1065_vm5, %v1326_v21 }
  0xc3   : > { %1068 = vmatmul.msk.bf16.gmra.mxu0 %vm1067_vm8, %v1326_v21  ;;  %1076 = vmatmul.msk.bf16.gmra.mxu1 %vm1067_vm8, %v1326_v21 }
  0xc4   : > { %1084 = vmatmul.msk.bf16.gmra.mxu2 %vm1067_vm8, %v1326_v21 }
  0xd3   : > { %1070 = vmatmul.msk.bf16.gmra.mxu0 %vm1069_vm11, %v1326_v21  ;;  %1078 = vmatmul.msk.bf16.gmra.mxu1 %vm1069_vm11, %v1326_v21 }
  0xd4   : > { %1086 = vmatmul.msk.bf16.gmra.mxu2 %vm1069_vm11, %v1326_v21 }
 0x120   : > { %v536_v28 = vpop.f32.mrf.mxu0  ;;  %v565_v29 = vpop.f32.mrf.mxu1 }
 0x121   : > { %v622_v61 = vrot.slane %v565_v29, 1 }
 0x123   : > { %v638_v10 = vadd.f32 %v622_v61, %v536_v28  ;;  %v829_v61 = vld [vmem:[#allocation5 + $0x58] sm:$0xff] }
 0x127   : > { %v1458_v30 = vpop.f32.mrf.mxu2 }
 0x128   : > { %v538_v31 = vpop.f32.mrf.mxu0  ;;  %v567_v32 = vpop.f32.mrf.mxu1  ;;  %v654_v5 = vrot.slane %v1458_v30, 2 }
 0x129   : > { %v623_v48 = vrot.slane %v567_v32, 1 }
 0x12a   : > { %v670_v16 = vadd.f32 %v654_v5, %v638_v10 }
 0x12b   : > { %v639_v56 = vadd.f32 %v623_v48, %v538_v31  ;;  %v747_v31 = vld [vmem:[%s1561_s3] sm:$0xff] }
 0x12c   : > { %v679_v28 = vsel %vm678_vm12, %v670_v16, -inf  ;;  %812 = vmatpush.msra.mxu3 %v747_v31 }
 0x12d   : > { %v680_v36 = vrot.slane %v679_v28, 4 }
 0x12e   : > { %838 = vmatpush.msrb.mxu3 %v833_v41  ;;  %v822_v41 = vld [vmem:[#allocation5 + $0x20] sm:$0xff] }
 0x12f   : > { %v596_v33 = vpop.f32.mrf.mxu2 }
 0x130   : > { %v541_v34 = vpop.f32.mrf.mxu0  ;;  %v570_v35 = vpop.f32.mrf.mxu1  ;;  %v655_v51 = vrot.slane %v596_v33, 2  ;;  %839 = vmatpush.msrb.mxu3 %v832_v42 }
 0x131   : > { %v624_v50 = vrot.slane %v570_v35, 1 }
 0x132   : > { %v671_v62 = vadd.f32 %v655_v51, %v639_v56  ;;  %840 = vmatpush.msrb.mxu3 %v831_v49 }
 0x133   : > { %v640_v59 = vadd.f32 %v624_v50, %v541_v34  ;;  %v681_v50 = vmax.f32 %v679_v28, %v680_v36  ;;  %v823_v36 = vld [vmem:[#allocation5 + $0x28] sm:$0xff] }
 0x134   : > { %v686_v11 = vsel %vm678_vm12, %v671_v62, -inf }
 0x135   : > { %v687_v19 = vrot.slane %v686_v11, 4  ;;  %v682_v62 = vrot.slane %v681_v50, 2 }
 0x137   : > { %v599_v37 = vpop.f32.mrf.mxu2  ;;  %v688_v32 = vmax.f32 %v686_v11, %v687_v19  ;;  %v827_v11 = vld [vmem:[#allocation5 + $0x48] sm:$0xff] }
 0x138   : > { %v543_v38 = vpop.f32.mrf.mxu0  ;;  %v572_v39 = vpop.f32.mrf.mxu1  ;;  %v656_v54 = vrot.slane %v599_v37, 2 }
 0x139   : > { %v625_v52 = vrot.slane %v572_v39, 1  ;;  %v689_v43 = vrot.slane %v688_v32, 2 }
 0x13a   : > { %v672_v3 = vadd.f32 %v656_v54, %v640_v59 }
 0x13b   : > { %v641_v63 = vadd.f32 %v625_v52, %v543_v38  ;;  %v690_v56 = vmax.f32 %v688_v32, %v689_v43 }
 0x13c   : > { %v693_v14 = vsel %vm678_vm12, %v672_v3, -inf }
 0x13d   : > { %v694_v22 = vrot.slane %v693_v14, 4  ;;  %v691_v3 = vrot.slane %v690_v56, 1 }
 0x13f   : > { %v601_v44 = vpop.f32.mrf.mxu2  ;;  %v695_v33 = vmax.f32 %v693_v14, %v694_v22  ;;  %v692_v18 = vmax.f32 %v690_v56, %v691_v3  ;;  %v1185_v3 = vld [vmem:[%s1562_s4] ss:$0 sm:$0xff] }
 0x140   : > { %v575_v45 = vpop.f32.mrf.mxu1  ;;  %v546_v47 = vpop.f32.mrf.mxu0  ;;  %v657_v57 = vrot.slane %v601_v44, 2 }
 0x141   : > { %v626_v55 = vrot.slane %v575_v45, 1  ;;  %v696_v46 = vrot.slane %v695_v33, 2 }
 0x142   : > { %v673_v6 = vadd.f32 %v657_v57, %v641_v63 }
 0x143   : > { %v642_v4 = vadd.f32 %v626_v55, %v546_v47  ;;  %v830_v55 = vld [vmem:[#allocation5 + $0x60] sm:$0xff]  ;;  %v697_v58 = vmax.f32 %v695_v33, %v696_v46 }
 0x144   : > { %v700_v17 = vsel %vm678_vm12, %v673_v6, -inf  ;;  %841 = vmatpush.msrb.mxu3 %v830_v55 }
 0x145   : > { %v701_v27 = vrot.slane %v700_v17, 4 }
 0x146   : > { %842 = vmatpush.msrb.mxu3 %v829_v61 }
 0x147   : > { %v604_v60 = vpop.f32.mrf.mxu2  ;;  %v702_v37 = vmax.f32 %v700_v17, %v701_v27  ;;  %v826_v17 = vld [vmem:[#allocation5 + $0x40] sm:$0xff] }
 0x148   : > { %v658_v0 = vrot.slane %v604_v60, 2  ;;  %v577_v1 = vpop.f32.mrf.mxu1  ;;  %v548_v9 = vpop.f32.mrf.mxu0  ;;  %843 = vmatpush.msrb.mxu3 %v828_v2  ;;  %v818_v2 = vld [vmem:[#allocation5] sm:$0xff] }
 0x149   : > { %v627_v12 = vrot.slane %v577_v1, 1  ;;  %v703_v51 = vrot.slane %v702_v37, 2 }
 0x14a   : > { %v674_v8 = vadd.f32 %v658_v0, %v642_v4  ;;  %844 = vmatpush.msrb.mxu3 %v827_v11 }
 0x14b   : > { %v643_v23 = vadd.f32 %v627_v12, %v548_v9  ;;  %v704_v63 = vmax.f32 %v702_v37, %v703_v51  ;;  %v683_v12 = vmax.f32 %v681_v50, %v682_v62 }
 0x14c   : > { %v707_v20 = vsel %vm678_vm12, %v674_v8, -inf  ;;  %v698_v8 = vrot.slane %v697_v58, 1  ;;  %845 = vmatpush.msrb.mxu3 %v826_v17 }
 0x14d   : > { %v708_v29 = vrot.slane %v707_v20, 4  ;;  %v705_v13 = vrot.slane %v704_v63, 1 }
 0x14f   : > { %v606_v21 = vpop.f32.mrf.mxu2  ;;  %v709_v40 = vmax.f32 %v707_v20, %v708_v29  ;;  %v706_v26 = vmax.f32 %v704_v63, %v705_v13 }
 0x150   : > { %v659_v24 = vrot.slane %v606_v21, 2  ;;  %v580_v25 = vpop.f32.mrf.mxu1  ;;  %v551_v39 = vpop.f32.mrf.mxu0  ;;  %v699_v21 = vmax.f32 %v697_v58, %v698_v8 }
 0x151   : > { %v628_v35 = vrot.slane %v580_v25, 1  ;;  %v710_v53 = vrot.slane %v709_v40, 2  ;;  %v1184_v25 = vld [vmem:[%s1560_s2] ss:$0 sm:$0xff] }
 0x152   : > { %v675_v30 = vadd.f32 %v659_v24, %v643_v23  ;;  %v825_v23 = vld [vmem:[#allocation5 + $0x38] sm:$0xff]  ;;  %v684_v24 = vrot.slane %v683_v12, 1  ;;  %v740_v31 = vadd.f32 %v1184_v25, %v692_v18 }
 0x153   : > { %v644_v47 = vadd.f32 %v628_v35, %v551_v39  ;;  %v711_v1 = vmax.f32 %v709_v40, %v710_v53  ;;  %846 = vmatpush.msrb.mxu3 %v825_v23 }
 0x154   : > { %v714_v34 = vsel %vm678_vm12, %v675_v30, -inf  ;;  %v824_v30 = vld [vmem:[#allocation5 + $0x30] sm:$0xff]  ;;  %v685_v37 = vmax.f32 %v683_v12, %v684_v24  ;;  %v775_v42 = vrot.slane %v740_v31, 7 }
 0x155   : > { %v715_v38 = vrot.slane %v714_v34, 4  ;;  %v712_v15 = vrot.slane %v711_v1, 1  ;;  %847 = vmatpush.msrb.mxu3 %v824_v30 }
 0x157   : > { %v716_v44 = vmax.f32 %v714_v34, %v715_v38  ;;  %v609_v45 = vpop.f32.mrf.mxu2  ;;  %v713_v29 = vmax.f32 %v711_v1, %v712_v15  ;;  %v741_v34 = vadd.f32 %v1184_v25, %v699_v21  ;;  %v742_v38 = vadd.f32 %v1184_v25, %v706_v26  ;;  %848 = vmatpush.msrb.mxu3 %v823_v36  ;;  %v819_v1 = vld [vmem:[#allocation5 + $0x8] sm:$0xff] }
 0x158   : > { %v660_v48 = vrot.slane %v609_v45, 2  ;;  %v582_v52 = vpop.f32.mrf.mxu1  ;;  %v553_v6 = vpop.f32.mrf.mxu0 }
 0x159   : > { %v717_v57 = vrot.slane %v716_v44, 2  ;;  %v629_v60 = vrot.slane %v582_v52, 1  ;;  %v743_v40 = vadd.f32 %v1184_v25, %v713_v29  ;;  %v778_v45 = vrot.slane %v741_v34, 6  ;;  %849 = vmatpush.msrb.mxu3 %v822_v41 }
 0x15a   : > { %v676_v54 = vadd.f32 %v660_v48, %v644_v47  ;;  %v821_v47 = vld [vmem:[#allocation5 + $0x18] sm:$0xff]  ;;  %v739_v48 = vadd.f32 %v1184_v25, %v685_v37  ;;  %v781_v49 = vrot.slane %v742_v38, 5 }
 0x15b   : > { %v718_v4 = vmax.f32 %v716_v44, %v717_v57  ;;  %v645_v9 = vadd.f32 %v629_v60, %v553_v6  ;;  %v784_v51 = vrot.slane %v743_v40, 4  ;;  %850 = vmatpush.msrb.mxu3 %v821_v47 }
 0x15c   : > { %v721_v59 = vsel %vm678_vm12, %v676_v54, -inf  ;;  %v777_v53 = vsel %vm776_vm13, %v775_v42, %v739_v48 }
 0x15d   : > { %v722_v0 = vrot.slane %v721_v59, 4  ;;  %v719_v19 = vrot.slane %v718_v4, 1  ;;  %v780_v55 = vsel %vm779_vm14, %v778_v45, %v777_v53 }
 0x15e   : > { %v783_v58 = vsel %vm782_vm15, %v781_v49, %v780_v55 }
 0x15f   : > { %v723_v5 = vmax.f32 %v721_v59, %v722_v0  ;;  %v611_v7 = vpop.f32.mrf.mxu2  ;;  %v720_v32 = vmax.f32 %v718_v4, %v719_v19  ;;  %v786_v59 = vsel %vm785_vm0, %v784_v51, %v783_v58  ;;  %v820_v0 = vld [vmem:[#allocation5 + $0x10] sm:$0xff] }
 0x160   : > { %v661_v10 = vrot.slane %v611_v7, 2  ;;  %851 = vmatpush.msrb.mxu3 %v820_v0  ;;  %v1186_v7 = vld [vmem:[%s1564_s6] ss:$0 sm:$0xff] }
 0x161   : > { %v724_v14 = vrot.slane %v723_v5, 2  ;;  %v744_v44 = vadd.f32 %v1184_v25, %v720_v32 }
 0x162   : > { %v677_v16 = vadd.f32 %v661_v10, %v645_v9  ;;  %852 = vmatpush.msrb.mxu3 %v819_v1 }
 0x163   : > { %v725_v20 = vmax.f32 %v723_v5, %v724_v14  ;;  %v787_v54 = vrot.slane %v744_v44, 3 }
 0x164   : > { %v728_v22 = vsel %vm678_vm12, %v677_v16, -inf  ;;  %853 = vmatpush.msrb.mxu3 %v818_v2 }
 0x165   : > { %v726_v27 = vrot.slane %v725_v20, 1  ;;  %v729_v28 = vrot.slane %v728_v22, 4  ;;  %v789_v60 = vsel %vm788_vm1, %v787_v54, %v786_v59 }
 0x167   : > { %v730_v33 = vmax.f32 %v728_v22, %v729_v28  ;;  %v727_v35 = vmax.f32 %v725_v20, %v726_v27 }
 0x169   : > { %v731_v39 = vrot.slane %v730_v33, 2  ;;  %v745_v46 = vadd.f32 %v1184_v25, %v727_v35 }
 0x16b   : > { %v732_v43 = vmax.f32 %v730_v33, %v731_v39  ;;  %v790_v56 = vrot.slane %v745_v46, 2 }
 0x16d   : > { %v733_v50 = vrot.slane %v732_v43, 1  ;;  %v792_v62 = vsel %vm791_vm2, %v790_v56, %v789_v60 }
 0x16f   : > { %v734_v52 = vmax.f32 %v732_v43, %v733_v50 }
 0x171   : > { %v746_v57 = vadd.f32 %v1184_v25, %v734_v52 }
 0x173   : > { %v793_v61 = vrot.slane %v746_v57, 1 }
 0x175   : > { %v795_v63 = vsel %vm794_vm3, %v793_v61, %v792_v62 }
 0x176   : > { %813 = vmatmul.f32.vlgmr.msra.gmra.mxu3 %v795_v63 }
 0x1f9   : > { %v814_v4 = vpop.f32.mrf.mxu3 }
 0x1fa   : > { %v815_v5 = vadd.f32 %v1185_v3, %v814_v4 }
 0x1fc   : > { %v817_v6 = vmax.f32 %v815_v5, 0.0 }
 0x1fe   : > { %854 = vmatmul.f32.vlgmr.msrb.gmra.mxu3 %v817_v6 }
 0x281   : > { %v855_v8 = vpop.f32.mrf.mxu3 }
 0x282   : > { %v856_v9 = vadd.f32 %v1186_v7, %v855_v8 }
 0x284   : > { %858 = vst [vmem:[%s306_s20] sm:$0xff] %v856_v9 }
 0x285   : > { %1274 = shalt.err (!%p1271_p8)
}
 0x286   : > { %1123 = dma.vmem_to_hbm [thread:$0]  (%p1405_p5), %s873_s21, 128, %s875_s22, %s860_s23  }
 0x287 PF: > { %p1140_p9 = scmp.ge.s32.totalorder %s1317_s27, 2  ;;  %s886_s14 = sand.u32 1, %s1305_s24  }
 0x288   : > { %s887_s18 = scalar_lea.sflag [#allocation4], %s886_s14 }
 0x289   : > { %p1133_p10 = pnand %p1140_p9, %p1409_p6 }
 0x28b   : > { %p1134_p11 = pneg %p1133_p10 }
 0x28d   : > { %1300 = dma.done.wait (%p1134_p11), %s887_s18, 128  }
 0x28e   : > { %1302 = vsyncadd (%p1134_p11), %s887_s18, 4294967168  ;;  %p19_p12 = scmp.ge.s32.totalorder %s1392_s30, 4   ;;  %s1569_s24 = smov %s1309_s25 }
 0x28f   : > { %s1570_s25 = smov %s1313_s26  ;;  %s1571_s26 = smov %s1403_s10 }
 0x290   : > { %s1572_s27 = smov %s1392_s30  ;;  %21 = sbr.rel (!%p19_p12) target bundleno = 5 (0x5), region = 92 }
 0x295   :  { %893 = vsyncpa [#allocation3], 1 }
 0x296   :  { %895 = vsyncpa [#allocation3 + $0x1], 1 }
 0x297   :  { %896 = vsyncpa [#allocation6], 1 }
 0x298   :  { %897 = vsyncpa [#allocation4], 1 }
 0x299   :  { %899 = vsyncpa [#allocation4 + $0x1], 1 }

</bundles_post_ra>
